<compile_context>
chip_gen: v5e
topology: v5e:2x2
jax: 0.10.0
libtpu: 0.0.40
codegen_flags: <defaults>
</compile_context>

<pallas_src>
import math
import functools

import jax
import jax.numpy as jnp
from jax import lax
from jax.experimental import pallas as pl
from jax.experimental.pallas import tpu as pltpu


# ---------------------------------------------------------------------------
# Kernel
# ---------------------------------------------------------------------------
def _attention_kernel(x_ref, wqkv_ref, bqkv_ref, wp_ref, bp_ref, o_ref,
                      ctx_ref, *, n_heads, approx_recip):
    # x_ref block: (Bb, T, C); wqkv: (C, 3C); bqkv: (1, 3C); wp: (C, C);
    # bp: (1, C); ctx_ref: (Bb, T, C) f32 scratch.
    Bb, T, C = x_ref.shape
    N = n_heads
    D = C // N
    dot_dtype = x_ref.dtype

    x = x_ref[...]                                           # (Bb, T, C)

    # Fused QKV projection: one wide MXU matmul with N-dim 3C, f32
    # accumulation.  1/sqrt(D) is already folded into the Q columns.
    qkv = jnp.einsum('btc,cf->btf', x, wqkv_ref[...],
                     preferred_element_type=jnp.float32)
    qkv = (qkv + bqkv_ref[0]).astype(dot_dtype)              # (Bb, T, 3C)

    # Causal mask: row t attends to cols s <= t.
    row = lax.broadcasted_iota(jnp.int32, (T, T), 0)
    col = lax.broadcasted_iota(jnp.int32, (T, T), 1)
    causal = (row >= col)[None]                              # (1, T, T)
    neg = jnp.float32(-1e30)    # finite: diagonal is always unmasked -> no NaN

    # Per-head attention.  N is a static Python int, so this loop is unrolled;
    # every matmul keeps its contraction on the last (lane) dim, and each
    # head's context is stored into the f32 scratch so a single lane-dense
    # output projection (K = C) can be done after the loop.
    # TODO(synk): for D < 128 the per-head lane slices force a relayout copy
    # and the K=D score/PV contraction underfills the MXU; group ceil(128/D)
    # heads per matmul (or pad head_dim to 128) when scaling hidden_dim up.
    # TODO(synk): for long contexts (T >~ 512) tile the key axis flash-style
    # and move heads to a grid axis to bound live ranges / VMEM peak.
    for h in range(N):
        lo = h * D
        qh = qkv[:, :, lo:lo + D]                            # (Bb, T, D)
        kh = qkv[:, :, C + lo:C + lo + D]                    # (Bb, T, D)
        vh = qkv[:, :, 2 * C + lo:2 * C + lo + D]            # (Bb, T, D)

        s = jnp.einsum('btd,bsd->bts', qh, kh,
                       preferred_element_type=jnp.float32)   # (Bb, T, T)
        s = jnp.where(causal, s, neg)

        # Softmax in f32 with deferred normalization: only the (Bb, T, D)
        # context is multiplied by 1/denom, never the (Bb, T, T) matrix.
        m = jnp.max(s, axis=-1, keepdims=True)
        p = jnp.exp(s - m)
        denom = jnp.sum(p, axis=-1, keepdims=True)           # (Bb, T, 1)

        ctx = jnp.einsum('bts,bsd->btd', p.astype(dot_dtype), vh,
                         preferred_element_type=jnp.float32)  # (Bb, T, D)
        ctx_ref[:, :, lo:lo + D] = ctx * pl.reciprocal(denom,
                                                       approx=approx_recip)

    # Single output projection with contraction K = C (one MXU pass per tile
    # instead of N small K=D matmuls); bias added to the f32 accumulator.
    ctx_all = ctx_ref[...].astype(dot_dtype)
    out = jnp.einsum('btc,cf->btf', ctx_all, wp_ref[...],
                     preferred_element_type=jnp.float32) + bp_ref[0]

    # TODO(synk): att_drop / proj_drop are identity (eval-mode forward).
    o_ref[...] = out.astype(o_ref.dtype)


# ---------------------------------------------------------------------------
# Sizing helpers (generation-aware)
# ---------------------------------------------------------------------------
def _vmem_capacity_bytes():
    try:
        info = pltpu.get_tpu_info()
        cap = getattr(info, "vmem_capacity_bytes", None)
        if cap:
            return int(cap)
    except Exception:
        pass
    return 64 * 1024 * 1024   # conservative default (v7x-sized)


def _target_rows():
    # MXU M-dim is 128 on v5e, 256 on v6e/v7x.
    try:
        kind = jax.devices()[0].device_kind.lower()
    except Exception:
        kind = ""
    return 128 if "v5" in kind else 256


def _block_vmem_bytes(Bb, T, C, in_it, out_it):
    """Rough per-step VMEM footprint for a (Bb, T, C) block."""
    # Double-buffered pipeline blocks (x, fused weights/biases, wp/bp, out).
    x_blk = Bb * T * C * in_it
    o_blk = Bb * T * C * out_it
    w_blk = 3 * C * C * in_it + 3 * C * 4 + C * C * in_it + C * 4
    pipeline = 2 * (x_blk + o_blk + w_blk)
    # Persistent f32 context scratch.
    scratch = Bb * T * C * 4
    # Live intermediates: f32 qkv (+ its low-precision copy on the bf16 path),
    # a few (Bb, T, T) score/softmax temporaries, f32 output accumulator.
    qkv = Bb * T * 3 * C * 4 + (Bb * T * 3 * C * in_it if in_it < 4 else 0)
    scores = 3 * Bb * T * T * 4
    outacc = Bb * T * C * 4
    return pipeline + scratch + qkv + scores + outacc


def _pick_block_b(B, T, C, in_it, out_it, vmem_budget, target_rows):
    """Smallest divisor of B reaching >= target_rows projection rows while
    fitting the VMEM budget; keeps >= 2 grid steps whenever B > 1 so both
    v7x TensorCores get work and DMA overlaps compute."""
    divisors = [d for d in range(1, B + 1) if B % d == 0]
    candidates = [d for d in divisors if d <= B // 2] if B > 1 else divisors
    if not candidates:
        candidates = [1]
    fitting = [d for d in candidates
               if _block_vmem_bytes(d, T, C, in_it, out_it) <= vmem_budget]
    if not fitting:
        fitting = [1]
    for d in fitting:
        if d * T >= target_rows:
            return d
    return fitting[-1]


# ---------------------------------------------------------------------------
# Parameter prep (call once; hoists the QKV fusion + scale fold out of the
# per-invocation path)
# ---------------------------------------------------------------------------
def fuse_attention_params(wq, bq, wk, bk, wv, bv, wp, bp, *, n_heads,
                          compute_dtype=None):
    C = wq.shape[0]
    assert C % n_heads == 0, "hidden_dim must be divisible by n_heads"
    D = C // n_heads
    scale = 1.0 / math.sqrt(D)
    # Fold 1/sqrt(D) into the Q columns; fuse Q/K/V into one (C, 3C) weight.
    wqkv = jnp.concatenate([wq * scale, wk, wv], axis=1)
    bqkv = jnp.concatenate([bq * scale, bk, bv], axis=0)
    bqkv = bqkv.reshape(1, 3 * C).astype(jnp.float32)
    bp2 = bp.reshape(1, C).astype(jnp.float32)
    if compute_dtype is not None:
        # Cast matmul operands only; biases stay f32 (added to f32 accums).
        wqkv = wqkv.astype(compute_dtype)
        wp = wp.astype(compute_dtype)
    return wqkv, bqkv, wp, bp2


# ---------------------------------------------------------------------------
# Entry points
# ---------------------------------------------------------------------------
def masked_causal_attention_fused(x, wqkv, bqkv, wp, bp2, *, n_heads):
    B, T, C = x.shape
    assert C % n_heads == 0
    assert wqkv.shape == (C, 3 * C)
    out_dtype = x.dtype

    if x.dtype != wqkv.dtype:
        x = x.astype(wqkv.dtype)

    in_it = jnp.dtype(x.dtype).itemsize
    out_it = jnp.dtype(out_dtype).itemsize

    capacity = _vmem_capacity_bytes()
    usable = max(32 * 1024 * 1024, int(capacity * 0.78))

    Bb = _pick_block_b(B, T, C, in_it, out_it,
                       vmem_budget=usable, target_rows=_target_rows())
    grid = (B // Bb,)

    est = _block_vmem_bytes(Bb, T, C, in_it, out_it)
    vmem_limit = int(min(usable, max(32 * 1024 * 1024, int(est * 1.5))))

    approx_recip = bool(x.dtype != jnp.float32)
    kernel = functools.partial(_attention_kernel, n_heads=n_heads,
                               approx_recip=approx_recip)

    io_spec = pl.BlockSpec((Bb, T, C), lambda i: (i, 0, 0))

    return pl.pallas_call(
        kernel,
        out_shape=jax.ShapeDtypeStruct((B, T, C), out_dtype),
        grid_spec=pltpu.PrefetchScalarGridSpec(
            num_scalar_prefetch=0,
            grid=grid,
            in_specs=[io_spec,
                      pl.BlockSpec((C, 3 * C), lambda i: (0, 0)),
                      pl.BlockSpec((1, 3 * C), lambda i: (0, 0)),
                      pl.BlockSpec((C, C), lambda i: (0, 0)),
                      pl.BlockSpec((1, C), lambda i: (0, 0))],
            out_specs=io_spec,
            scratch_shapes=[pltpu.VMEM((Bb, T, C), jnp.float32)],
        ),
        compiler_params=pltpu.CompilerParams(
            dimension_semantics=("parallel",),
            vmem_limit_bytes=vmem_limit),
    )(x, wqkv, bqkv, wp, bp2)


def masked_causal_attention(x, wq, bq, wk, bk, wv, bv, wp, bp, *, n_heads,
                            compute_dtype=None):
    """Convenience wrapper: fuses params per call.  In real use, call
    fuse_attention_params() once and masked_causal_attention_fused() per step."""
    params = fuse_attention_params(wq, bq, wk, bk, wv, bv, wp, bp,
                                   n_heads=n_heads, compute_dtype=compute_dtype)
    return masked_causal_attention_fused(x, *params, n_heads=n_heads)


# ---------------------------------------------------------------------------
# Pure-JAX reference (mirrors the PyTorch module)
# ---------------------------------------------------------------------------
def _reference(x, wq, bq, wk, bk, wv, bv, wp, bp, *, n_heads):
    B, T, C = x.shape
    N, D = n_heads, C // n_heads
    q = (x @ wq + bq).reshape(B, T, N, D).transpose(0, 2, 1, 3)
    k = (x @ wk + bk).reshape(B, T, N, D).transpose(0, 2, 1, 3)
    v = (x @ wv + bv).reshape(B, T, N, D).transpose(0, 2, 1, 3)
    w = jnp.einsum('bntd,bnsd->bnts', q, k) / math.sqrt(D)
    mask = jnp.tril(jnp.ones((T, T), dtype=bool))
    w = jnp.where(mask[None, None], w, -jnp.inf)
    a = jax.nn.softmax(w, axis=-1)
    ctx = jnp.einsum('bnts,bnsd->bntd', a, v).transpose(0, 2, 1, 3).reshape(B, T, C)
    return ctx @ wp + bp


if __name__ == "__main__":
    B, T, C = 2, 8, 32
    n_heads = 4

    key = jax.random.PRNGKey(0)
    keys = jax.random.split(key, 9)
    x = jax.random.normal(keys[0], (B, T, C), dtype=jnp.float32)

    def init_linear(kw, kb, fan_in, fan_out):
        # PyTorch nn.Linear default init: U(-1/sqrt(fan_in), 1/sqrt(fan_in))
        bound = 1.0 / math.sqrt(fan_in)
        w = jax.random.uniform(kw, (fan_in, fan_out), jnp.float32, -bound, bound)
        b = jax.random.uniform(kb, (fan_out,), jnp.float32, -bound, bound)
        return w, b

    wq, bq = init_linear(keys[1], keys[2], C, C)
    wk, bk = init_linear(keys[3], keys[4], C, C)
    wv, bv = init_linear(keys[5], keys[6], C, C)
    wp, bp = init_linear(keys[7], keys[8], C, C)

    ref = _reference(x, wq, bq, wk, bk, wv, bv, wp, bp, n_heads=n_heads)

    # Exact-precision path: params fused once (hoisted), f32 matmul operands,
    # exact reciprocal.
    params_f32 = fuse_attention_params(wq, bq, wk, bk, wv, bv, wp, bp,
                                       n_heads=n_heads)
    out = masked_causal_attention_fused(x, *params_f32, n_heads=n_heads)
    out = jax.block_until_ready(out)
    assert out.shape == (B, T, C)
    assert jnp.allclose(out, ref, atol=1e-4, rtol=1e-4), (
        f"max abs err = {jnp.max(jnp.abs(out - ref))}")

    # Fast path: bf16 matmul operands, f32 accumulation + f32 softmax,
    # approx (EUP) reciprocal applied to the context only.
    out_bf16 = masked_causal_attention(x, wq, bq, wk, bk, wv, bv, wp, bp,
                                       n_heads=n_heads,
                                       compute_dtype=jnp.bfloat16)
    out_bf16 = jax.block_until_ready(out_bf16)
    assert out_bf16.shape == (B, T, C)
    bf16_err = float(jnp.max(jnp.abs(out_bf16.astype(jnp.float32) - ref)))
    assert bf16_err < 0.25, f"bf16 max abs err = {bf16_err}"

    print("KERNEL_OK")
</pallas_src>

<mosaic_0001>
module attributes {stable_mosaic.version = 11 : i64} {
  func.func @_attention_kernel(%arg0: i32, %arg1: memref<1x8x32xf32, #tpu.memory_space<vmem>>, %arg2: memref<32x96xf32, #tpu.memory_space<vmem>>, %arg3: memref<1x96xf32, #tpu.memory_space<vmem>>, %arg4: memref<32x32xf32, #tpu.memory_space<vmem>>, %arg5: memref<1x32xf32, #tpu.memory_space<vmem>>, %arg6: memref<1x8x32xf32, #tpu.memory_space<vmem>>, %arg7: memref<1x8x32xf32, #tpu.memory_space<vmem>>) attributes {dimension_semantics = [#tpu.dimension_semantics<parallel>], iteration_bounds = array<i64: 2>, scalar_prefetch = 0 : i64, scratch_operands = 1 : i64, tpu.core_type = #tpu.core_type<tc>, window_params = [{transform_indices = @transform_0, window_bounds = array<i64: 1, 8, 32>}, {pipeline_mode = #tpu.pipeline_mode<synchronous>, transform_indices = @transform_1, window_bounds = array<i64: 32, 96>}, {pipeline_mode = #tpu.pipeline_mode<synchronous>, transform_indices = @transform_2, window_bounds = array<i64: 1, 96>}, {pipeline_mode = #tpu.pipeline_mode<synchronous>, transform_indices = @transform_3, window_bounds = array<i64: 32, 32>}, {pipeline_mode = #tpu.pipeline_mode<synchronous>, transform_indices = @transform_4, window_bounds = array<i64: 1, 32>}, {transform_indices = @transform_5, window_bounds = array<i64: 1, 8, 32>}]} {
    %c0 = arith.constant 0 : index
    %c0_0 = arith.constant 0 : index
    %c0_1 = arith.constant 0 : index
    %0 = vector.load %arg1[%c0, %c0_0, %c0_1] : memref<1x8x32xf32, #tpu.memory_space<vmem>>, vector<1x8x32xf32>
    %c0_2 = arith.constant 0 : index
    %c0_3 = arith.constant 0 : index
    %1 = vector.load %arg2[%c0_2, %c0_3] : memref<32x96xf32, #tpu.memory_space<vmem>>, vector<32x96xf32>
    "tpu.trace_start"() <{level = 10 : i32, message = "btc,cf->btf"}> : () -> ()
    %cst = arith.constant dense<0.000000e+00> : vector<1x8x96xf32>
    %2 = tpu.matmul %0, %1, %cst {dimension_numbers = #tpu.dot_dimension_numbers<[2], [0], [0, 1], [1], [0, 0, 0, 1, 1, 1], [], []>} : vector<1x8x32xf32>, vector<32x96xf32>, vector<1x8x96xf32> -> vector<1x8x96xf32>
    "tpu.trace_stop"() : () -> ()
    %c0_4 = arith.constant 0 : index
    %c0_5 = arith.constant 0 : index
    %3 = vector.load %arg3[%c0_4, %c0_5] : memref<1x96xf32, #tpu.memory_space<vmem>>, vector<1x96xf32>
    %4 = vector.shape_cast %3 : vector<1x96xf32> to vector<96xf32>
    %5 = vector.shape_cast %4 : vector<96xf32> to vector<1x1x96xf32>
    %6 = vector.broadcast %5 : vector<1x1x96xf32> to vector<1x8x96xf32>
    %7 = arith.addf %2, %6 : vector<1x8x96xf32>
    %8 = tpu.iota {dimensions = array<i32: 0>} : vector<8x8xi32>
    %9 = tpu.iota {dimensions = array<i32: 1>} : vector<8x8xi32>
    %10 = arith.cmpi sge, %8, %9 : vector<8x8xi32>
    %11 = vector.shape_cast %10 : vector<8x8xi1> to vector<1x8x8xi1>
    %12 = vector.extract_strided_slice %7 {offsets = [0, 0, 0], sizes = [1, 8, 8], strides = [1, 1, 1]} : vector<1x8x96xf32> to vector<1x8x8xf32>
    %13 = vector.extract_strided_slice %7 {offsets = [0, 0, 32], sizes = [1, 8, 8], strides = [1, 1, 1]} : vector<1x8x96xf32> to vector<1x8x8xf32>
    %14 = vector.extract_strided_slice %7 {offsets = [0, 0, 64], sizes = [1, 8, 8], strides = [1, 1, 1]} : vector<1x8x96xf32> to vector<1x8x8xf32>
    "tpu.trace_start"() <{level = 10 : i32, message = "btd,bsd->bts"}> : () -> ()
    %cst_6 = arith.constant dense<0.000000e+00> : vector<1x8x8xf32>
    %15 = tpu.matmul %12, %13, %cst_6 {dimension_numbers = #tpu.dot_dimension_numbers<[2], [2], [1], [1], [0, 0, 0, 1, 1, 1], [0], [0]>} : vector<1x8x8xf32>, vector<1x8x8xf32>, vector<1x8x8xf32> -> vector<1x8x8xf32>
    %cst_7 = arith.constant -1.000000e+30 : f32
    "tpu.trace_stop"() : () -> ()
    %16 = vector.broadcast %cst_7 : f32 to vector<1x8x8xf32>
    %17 = arith.select %11, %15, %16 : vector<1x8x8xi1>, vector<1x8x8xf32>
    %cst_8 = arith.constant dense<0xFF800000> : vector<1x8xf32>
    %18 = vector.multi_reduction <maximumf>, %17, %cst_8 [2] : vector<1x8x8xf32> to vector<1x8xf32>
    %19 = vector.shape_cast %18 : vector<1x8xf32> to vector<1x8x1xf32>
    %20 = vector.broadcast %19 : vector<1x8x1xf32> to vector<1x8x8xf32>
    %21 = arith.subf %17, %20 : vector<1x8x8xf32>
    %22 = math.exp %21 : vector<1x8x8xf32>
    %cst_9 = arith.constant dense<0.000000e+00> : vector<1x8xf32>
    %23 = vector.multi_reduction <add>, %22, %cst_9 [2] : vector<1x8x8xf32> to vector<1x8xf32>
    %24 = vector.shape_cast %23 : vector<1x8xf32> to vector<1x8x1xf32>
    "tpu.trace_start"() <{level = 10 : i32, message = "bts,bsd->btd"}> : () -> ()
    %cst_10 = arith.constant dense<0.000000e+00> : vector<1x8x8xf32>
    %25 = tpu.matmul %22, %14, %cst_10 {dimension_numbers = #tpu.dot_dimension_numbers<[2], [1], [1], [2], [0, 0, 0, 1, 1, 2], [0], [0]>} : vector<1x8x8xf32>, vector<1x8x8xf32>, vector<1x8x8xf32> -> vector<1x8x8xf32>
    "tpu.trace_stop"() : () -> ()
    %26 = tpu.reciprocal %24 : vector<1x8x1xf32> -> vector<1x8x1xf32>
    %27 = vector.broadcast %26 : vector<1x8x1xf32> to vector<1x8x8xf32>
    %28 = arith.mulf %25, %27 : vector<1x8x8xf32>
    %c0_11 = arith.constant 0 : index
    %c0_12 = arith.constant 0 : index
    %c0_13 = arith.constant 0 : index
    %29 = vector.load %arg7[%c0_11, %c0_12, %c0_13] : memref<1x8x32xf32, #tpu.memory_space<vmem>>, vector<1x8x8xf32>
    tpu.vector_store %arg7[%c0_11, %c0_12, %c0_13], %28 {strides = array<i32>} : memref<1x8x32xf32, #tpu.memory_space<vmem>>, vector<1x8x8xf32>,
    %30 = vector.extract_strided_slice %7 {offsets = [0, 0, 8], sizes = [1, 8, 8], strides = [1, 1, 1]} : vector<1x8x96xf32> to vector<1x8x8xf32>
    %31 = vector.extract_strided_slice %7 {offsets = [0, 0, 40], sizes = [1, 8, 8], strides = [1, 1, 1]} : vector<1x8x96xf32> to vector<1x8x8xf32>
    %32 = vector.extract_strided_slice %7 {offsets = [0, 0, 72], sizes = [1, 8, 8], strides = [1, 1, 1]} : vector<1x8x96xf32> to vector<1x8x8xf32>
    "tpu.trace_start"() <{level = 10 : i32, message = "btd,bsd->bts"}> : () -> ()
    %cst_14 = arith.constant dense<0.000000e+00> : vector<1x8x8xf32>
    %33 = tpu.matmul %30, %31, %cst_14 {dimension_numbers = #tpu.dot_dimension_numbers<[2], [2], [1], [1], [0, 0, 0, 1, 1, 1], [0], [0]>} : vector<1x8x8xf32>, vector<1x8x8xf32>, vector<1x8x8xf32> -> vector<1x8x8xf32>
    %cst_15 = arith.constant -1.000000e+30 : f32
    "tpu.trace_stop"() : () -> ()
    %34 = vector.broadcast %cst_15 : f32 to vector<1x8x8xf32>
    %35 = arith.select %11, %33, %34 : vector<1x8x8xi1>, vector<1x8x8xf32>
    %cst_16 = arith.constant dense<0xFF800000> : vector<1x8xf32>
    %36 = vector.multi_reduction <maximumf>, %35, %cst_16 [2] : vector<1x8x8xf32> to vector<1x8xf32>
    %37 = vector.shape_cast %36 : vector<1x8xf32> to vector<1x8x1xf32>
    %38 = vector.broadcast %37 : vector<1x8x1xf32> to vector<1x8x8xf32>
    %39 = arith.subf %35, %38 : vector<1x8x8xf32>
    %40 = math.exp %39 : vector<1x8x8xf32>
    %cst_17 = arith.constant dense<0.000000e+00> : vector<1x8xf32>
    %41 = vector.multi_reduction <add>, %40, %cst_17 [2] : vector<1x8x8xf32> to vector<1x8xf32>
    %42 = vector.shape_cast %41 : vector<1x8xf32> to vector<1x8x1xf32>
    "tpu.trace_start"() <{level = 10 : i32, message = "bts,bsd->btd"}> : () -> ()
    %cst_18 = arith.constant dense<0.000000e+00> : vector<1x8x8xf32>
    %43 = tpu.matmul %40, %32, %cst_18 {dimension_numbers = #tpu.dot_dimension_numbers<[2], [1], [1], [2], [0, 0, 0, 1, 1, 2], [0], [0]>} : vector<1x8x8xf32>, vector<1x8x8xf32>, vector<1x8x8xf32> -> vector<1x8x8xf32>
    "tpu.trace_stop"() : () -> ()
    %44 = tpu.reciprocal %42 : vector<1x8x1xf32> -> vector<1x8x1xf32>
    %45 = vector.broadcast %44 : vector<1x8x1xf32> to vector<1x8x8xf32>
    %46 = arith.mulf %43, %45 : vector<1x8x8xf32>
    %c0_19 = arith.constant 0 : index
    %c0_20 = arith.constant 0 : index
    %c8 = arith.constant 8 : index
    %47 = vector.load %arg7[%c0_19, %c0_20, %c8] : memref<1x8x32xf32, #tpu.memory_space<vmem>>, vector<1x8x8xf32>
    tpu.vector_store %arg7[%c0_19, %c0_20, %c8], %46 {strides = array<i32>} : memref<1x8x32xf32, #tpu.memory_space<vmem>>, vector<1x8x8xf32>,
    %48 = vector.extract_strided_slice %7 {offsets = [0, 0, 16], sizes = [1, 8, 8], strides = [1, 1, 1]} : vector<1x8x96xf32> to vector<1x8x8xf32>
    %49 = vector.extract_strided_slice %7 {offsets = [0, 0, 48], sizes = [1, 8, 8], strides = [1, 1, 1]} : vector<1x8x96xf32> to vector<1x8x8xf32>
    %50 = vector.extract_strided_slice %7 {offsets = [0, 0, 80], sizes = [1, 8, 8], strides = [1, 1, 1]} : vector<1x8x96xf32> to vector<1x8x8xf32>
    "tpu.trace_start"() <{level = 10 : i32, message = "btd,bsd->bts"}> : () -> ()
    %cst_21 = arith.constant dense<0.000000e+00> : vector<1x8x8xf32>
    %51 = tpu.matmul %48, %49, %cst_21 {dimension_numbers = #tpu.dot_dimension_numbers<[2], [2], [1], [1], [0, 0, 0, 1, 1, 1], [0], [0]>} : vector<1x8x8xf32>, vector<1x8x8xf32>, vector<1x8x8xf32> -> vector<1x8x8xf32>
    %cst_22 = arith.constant -1.000000e+30 : f32
    "tpu.trace_stop"() : () -> ()
    %52 = vector.broadcast %cst_22 : f32 to vector<1x8x8xf32>
    %53 = arith.select %11, %51, %52 : vector<1x8x8xi1>, vector<1x8x8xf32>
    %cst_23 = arith.constant dense<0xFF800000> : vector<1x8xf32>
    %54 = vector.multi_reduction <maximumf>, %53, %cst_23 [2] : vector<1x8x8xf32> to vector<1x8xf32>
    %55 = vector.shape_cast %54 : vector<1x8xf32> to vector<1x8x1xf32>
    %56 = vector.broadcast %55 : vector<1x8x1xf32> to vector<1x8x8xf32>
    %57 = arith.subf %53, %56 : vector<1x8x8xf32>
    %58 = math.exp %57 : vector<1x8x8xf32>
    %cst_24 = arith.constant dense<0.000000e+00> : vector<1x8xf32>
    %59 = vector.multi_reduction <add>, %58, %cst_24 [2] : vector<1x8x8xf32> to vector<1x8xf32>
    %60 = vector.shape_cast %59 : vector<1x8xf32> to vector<1x8x1xf32>
    "tpu.trace_start"() <{level = 10 : i32, message = "bts,bsd->btd"}> : () -> ()
    %cst_25 = arith.constant dense<0.000000e+00> : vector<1x8x8xf32>
    %61 = tpu.matmul %58, %50, %cst_25 {dimension_numbers = #tpu.dot_dimension_numbers<[2], [1], [1], [2], [0, 0, 0, 1, 1, 2], [0], [0]>} : vector<1x8x8xf32>, vector<1x8x8xf32>, vector<1x8x8xf32> -> vector<1x8x8xf32>
    "tpu.trace_stop"() : () -> ()
    %62 = tpu.reciprocal %60 : vector<1x8x1xf32> -> vector<1x8x1xf32>
    %63 = vector.broadcast %62 : vector<1x8x1xf32> to vector<1x8x8xf32>
    %64 = arith.mulf %61, %63 : vector<1x8x8xf32>
    %c0_26 = arith.constant 0 : index
    %c0_27 = arith.constant 0 : index
    %c16 = arith.constant 16 : index
    %65 = vector.load %arg7[%c0_26, %c0_27, %c16] : memref<1x8x32xf32, #tpu.memory_space<vmem>>, vector<1x8x8xf32>
    tpu.vector_store %arg7[%c0_26, %c0_27, %c16], %64 {strides = array<i32>} : memref<1x8x32xf32, #tpu.memory_space<vmem>>, vector<1x8x8xf32>,
    %66 = vector.extract_strided_slice %7 {offsets = [0, 0, 24], sizes = [1, 8, 8], strides = [1, 1, 1]} : vector<1x8x96xf32> to vector<1x8x8xf32>
    %67 = vector.extract_strided_slice %7 {offsets = [0, 0, 56], sizes = [1, 8, 8], strides = [1, 1, 1]} : vector<1x8x96xf32> to vector<1x8x8xf32>
    %68 = vector.extract_strided_slice %7 {offsets = [0, 0, 88], sizes = [1, 8, 8], strides = [1, 1, 1]} : vector<1x8x96xf32> to vector<1x8x8xf32>
    "tpu.trace_start"() <{level = 10 : i32, message = "btd,bsd->bts"}> : () -> ()
    %cst_28 = arith.constant dense<0.000000e+00> : vector<1x8x8xf32>
    %69 = tpu.matmul %66, %67, %cst_28 {dimension_numbers = #tpu.dot_dimension_numbers<[2], [2], [1], [1], [0, 0, 0, 1, 1, 1], [0], [0]>} : vector<1x8x8xf32>, vector<1x8x8xf32>, vector<1x8x8xf32> -> vector<1x8x8xf32>
    %cst_29 = arith.constant -1.000000e+30 : f32
    "tpu.trace_stop"() : () -> ()
    %70 = vector.broadcast %cst_29 : f32 to vector<1x8x8xf32>
    %71 = arith.select %11, %69, %70 : vector<1x8x8xi1>, vector<1x8x8xf32>
    %cst_30 = arith.constant dense<0xFF800000> : vector<1x8xf32>
    %72 = vector.multi_reduction <maximumf>, %71, %cst_30 [2] : vector<1x8x8xf32> to vector<1x8xf32>
    %73 = vector.shape_cast %72 : vector<1x8xf32> to vector<1x8x1xf32>
    %74 = vector.broadcast %73 : vector<1x8x1xf32> to vector<1x8x8xf32>
    %75 = arith.subf %71, %74 : vector<1x8x8xf32>
    %76 = math.exp %75 : vector<1x8x8xf32>
    %cst_31 = arith.constant dense<0.000000e+00> : vector<1x8xf32>
    %77 = vector.multi_reduction <add>, %76, %cst_31 [2] : vector<1x8x8xf32> to vector<1x8xf32>
    %78 = vector.shape_cast %77 : vector<1x8xf32> to vector<1x8x1xf32>
    "tpu.trace_start"() <{level = 10 : i32, message = "bts,bsd->btd"}> : () -> ()
    %cst_32 = arith.constant dense<0.000000e+00> : vector<1x8x8xf32>
    %79 = tpu.matmul %76, %68, %cst_32 {dimension_numbers = #tpu.dot_dimension_numbers<[2], [1], [1], [2], [0, 0, 0, 1, 1, 2], [0], [0]>} : vector<1x8x8xf32>, vector<1x8x8xf32>, vector<1x8x8xf32> -> vector<1x8x8xf32>
    "tpu.trace_stop"() : () -> ()
    %80 = tpu.reciprocal %78 : vector<1x8x1xf32> -> vector<1x8x1xf32>
    %81 = vector.broadcast %80 : vector<1x8x1xf32> to vector<1x8x8xf32>
    %82 = arith.mulf %79, %81 : vector<1x8x8xf32>
    %c0_33 = arith.constant 0 : index
    %c0_34 = arith.constant 0 : index
    %c24 = arith.constant 24 : index
    %83 = vector.load %arg7[%c0_33, %c0_34, %c24] : memref<1x8x32xf32, #tpu.memory_space<vmem>>, vector<1x8x8xf32>
    tpu.vector_store %arg7[%c0_33, %c0_34, %c24], %82 {strides = array<i32>} : memref<1x8x32xf32, #tpu.memory_space<vmem>>, vector<1x8x8xf32>,
    %c0_35 = arith.constant 0 : index
    %c0_36 = arith.constant 0 : index
    %c0_37 = arith.constant 0 : index
    %84 = vector.load %arg7[%c0_35, %c0_36, %c0_37] : memref<1x8x32xf32, #tpu.memory_space<vmem>>, vector<1x8x32xf32>
    %c0_38 = arith.constant 0 : index
    %c0_39 = arith.constant 0 : index
    %85 = vector.load %arg4[%c0_38, %c0_39] : memref<32x32xf32, #tpu.memory_space<vmem>>, vector<32x32xf32>
    "tpu.trace_start"() <{level = 10 : i32, message = "btc,cf->btf"}> : () -> ()
    %cst_40 = arith.constant dense<0.000000e+00> : vector<1x8x32xf32>
    %86 = tpu.matmul %84, %85, %cst_40 {dimension_numbers = #tpu.dot_dimension_numbers<[2], [0], [0, 1], [1], [0, 0, 0, 1, 1, 1], [], []>} : vector<1x8x32xf32>, vector<32x32xf32>, vector<1x8x32xf32> -> vector<1x8x32xf32>
    "tpu.trace_stop"() : () -> ()
    %c0_41 = arith.constant 0 : index
    %c0_42 = arith.constant 0 : index
    %87 = vector.load %arg5[%c0_41, %c0_42] : memref<1x32xf32, #tpu.memory_space<vmem>>, vector<1x32xf32>
    %88 = vector.shape_cast %87 : vector<1x32xf32> to vector<32xf32>
    %89 = vector.shape_cast %88 : vector<32xf32> to vector<1x1x32xf32>
    %90 = vector.broadcast %89 : vector<1x1x32xf32> to vector<1x8x32xf32>
    %91 = arith.addf %86, %90 : vector<1x8x32xf32>
    %c0_43 = arith.constant 0 : index
    %c0_44 = arith.constant 0 : index
    %c0_45 = arith.constant 0 : index
    %92 = vector.load %arg6[%c0_43, %c0_44, %c0_45] : memref<1x8x32xf32, #tpu.memory_space<vmem>>, vector<1x8x32xf32>
    tpu.vector_store %arg6[%c0_43, %c0_44, %c0_45], %91 {strides = array<i32>} : memref<1x8x32xf32, #tpu.memory_space<vmem>>, vector<1x8x32xf32>,
    return
  }
  func.func @transform_0(%arg0: i32) -> (i32, i32, i32) {
    %c0_i32 = arith.constant 0 : i32
    %c0_i32_0 = arith.constant 0 : i32
    %c0_i32_1 = arith.constant 0 : i32
    return %arg0, %c0_i32, %c0_i32_0 : i32, i32, i32
  }
  func.func @transform_1(%arg0: i32) -> (i32, i32) {
    %c0_i32 = arith.constant 0 : i32
    %c0_i32_0 = arith.constant 0 : i32
    %c0_i32_1 = arith.constant 0 : i32
    return %c0_i32, %c0_i32_0 : i32, i32
  }
  func.func @transform_2(%arg0: i32) -> (i32, i32) {
    %c0_i32 = arith.constant 0 : i32
    %c0_i32_0 = arith.constant 0 : i32
    %c0_i32_1 = arith.constant 0 : i32
    return %c0_i32, %c0_i32_0 : i32, i32
  }
  func.func @transform_3(%arg0: i32) -> (i32, i32) {
    %c0_i32 = arith.constant 0 : i32
    %c0_i32_0 = arith.constant 0 : i32
    %c0_i32_1 = arith.constant 0 : i32
    return %c0_i32, %c0_i32_0 : i32, i32
  }
  func.func @transform_4(%arg0: i32) -> (i32, i32) {
    %c0_i32 = arith.constant 0 : i32
    %c0_i32_0 = arith.constant 0 : i32
    %c0_i32_1 = arith.constant 0 : i32
    return %c0_i32, %c0_i32_0 : i32, i32
  }
  func.func @transform_5(%arg0: i32) -> (i32, i32, i32) {
    %c0_i32 = arith.constant 0 : i32
    %c0_i32_0 = arith.constant 0 : i32
    %c0_i32_1 = arith.constant 0 : i32
    return %arg0, %c0_i32, %c0_i32_0 : i32, i32, i32
  }
}

</mosaic_0001>

<bundles_post_ra>
// kernel: tpu_custom_call.1
= control target key start
LH: loop header
LB: loop body
LE: loop exit
PB: predicated region body
PF: predicated region fallthrough
CT: control target
= control target key end

     0   :  { %10 = vsyncpa [#allocation4], 0  ;;  %s1320_s0 = inlined_call_operand.hbm [shape: f32[2,8,32], index: 0, kind: input, shape index: {}]   ;;  %s1321_s1 = inlined_call_operand.hbm [shape: f32[32,96], index: 1, kind: input, shape index: {}]   ;;  %s1322_s2 = inlined_call_operand.vmem [shape: f32[1,96], index: 2, kind: input, shape index: {}]   ;;  %s1323_s3 = inlined_call_operand.hbm [shape: f32[32,32], index: 3, kind: input, shape index: {}]   ;;  %s1324_s4 = inlined_call_operand.vmem [shape: f32[1,32], index: 4, kind: input, shape index: {}]   ;;  %s1325_s5 = inlined_call_operand.hbm [shape: f32[2,8,32], index: 5, kind: output, shape index: {}]  }
   0x1   :  { %12 = vsyncpa [#allocation4 + $0x1], 0 }
   0x2   :  { %13 = vsyncpa [#allocation7], 0 }
   0x3   :  { %14 = vsyncpa [#allocation5], 0 }
   0x4   :  { %16 = vsyncpa [#allocation5 + $0x1], 0  ;;  %s1127_s18 = smov 0   ;;  %s1129_s19 = smov 0  }
   0x5   :  { %s1131_s20 = smov 0   ;;  %s1133_s21 = smov 0  }
   0x6 LB: > { %s174_s24 = sshll.u32 %s1321_s1, 4  ;;  %s1151_s25 = sadd.s32 4294967295, %s1077_s21   ;;  %s1077_s21 = sphi %s1133_s21, %s1336_s21   ;;  %s1073_s20 = sphi %s1131_s20, %s1335_s20   ;;  %s1069_s19 = sphi %s1129_s19, %s1334_s19   ;;  %s1065_s18 = sphi %s1127_s18, %s1333_s18   ;;  %s175_s24 = int_to_ptr.hbm [resolvable:$true] %s174_s24 }
   0x7   : > { %p787_p0 = scmp.ge.s32.totalorder %s1077_s21, 1  ;;  %p43_p1 = scmp.eq.s32.totalorder %s1151_s25, 0 }
   0x8   : > { %p163_p2 = scmp.lt.s32.totalorder %s1077_s21, 3  ;;  %s1079_s27 = smov [#allocation6]  }
   0x9   : > { %s176_s28 = sshll.u32 %s1079_s27, 4  ;;  %s191_s6 = sshll.u32 %s1323_s3, 4  ;;  %s177_s28 = int_to_ptr.vmem [resolvable:$true] %s176_s28  ;;  %s192_s6 = int_to_ptr.hbm [resolvable:$true] %s191_s6 }
   0xa   : > { %p1156_p3 = pnand %p787_p0, %p163_p2  ;;  %s1080_s7 = smov [#allocation8]  }
   0xb   : > { %s193_s8 = sshll.u32 %s1080_s7, 4  ;;  %s1081_s9 = smov 128   ;;  %s194_s8 = int_to_ptr.vmem [resolvable:$true] %s193_s8 }
   0xc   : > { %p828_p4 = pneg %p1156_p3  ;;  %s1082_s10 = smov 8  }
   0xd   : > { %s786_s11 = sadd.s32 4294967294, %s1077_s21   ;;  %s1170_s12 = sadd.s32 1, %s1077_s21  }
   0xe   : > { %p829_p6 = pnand %p828_p4, %p43_p1  ;;  %s26_s13 = ssub.s32 %s1077_s21, %s1170_s12 }
   0xf   : > { %s29_s14 = sadd.s32 1, %s1073_s20  ;;  %p27_p7 = scmp.eq.s32.totalorder %s26_s13, 0 }
  0x10   : > { %831 = dma.hbm_to_vmem [thread:$0]  (!%p829_p6), %s175_s24, 512, %s177_s28, [#allocation7], %s1081_s9, %s1081_s9, %s1082_s10  }
  0x11   : > { %834 = dma.hbm_to_vmem [thread:$0]  (!%p829_p6), %s192_s6, 512, %s194_s8, [#allocation7], %s1081_s9, %s1081_s9, %s1082_s10  }
  0x12   : > { %p36_p8 = scmp.ne.s32.totalorder %s1073_s20, %s1069_s19  ;;  %p37_p9 = scmp.eq.s32.totalorder %s1077_s21, 0 }
  0x13   : > { %p42_p10 = scmp.ne.s32.totalorder %s1069_s19, %s1065_s18  ;;  %p150_p13 = scmp.eq.s32.totalorder %s1151_s25, 1 }
  0x14   : > { %s1181_s15 = scalar_select %p27_p7, %s1073_s20, %s29_s14  }
  0x15   : > { %p1183_p11 = por %p37_p9, %p36_p8  ;;  %p1189_p12 = por %p43_p1, %p42_p10 }
  0x16   : > { %p156_p0 = scmp.eq.s32.totalorder %s786_s11, 1  ;;  %p845_p2 = scmp.lt.s32.totalorder %s1077_s21, 2 }
  0x17   : > { %s210_s22 = sand.u32 1, %s1073_s20   ;;  %p1196_p4 = por %p150_p13, %p36_p8 }
  0x18   : > { %p1200_p6 = por %p156_p0, %p42_p10  ;;  %s791_s27 = sshll.u32 %s210_s22, 3 }
  0x19   : > { %s792_s28 = sshll.u32 %s1077_s21, 3  ;;  %s214_s7 = scalar_lea.vmem [#allocation3], %s791_s27 }
  0x1a   : > { %s218_s6 = scalar_lea.hbm %s1320_s0, %s792_s28  ;;  %s222_s8 = sshll.u32 %s214_s7, 4  ;;  %s223_s8 = int_to_ptr.vmem [resolvable:$true] %s222_s8 }
  0x1b   : > { %s220_s9 = sshll.u32 %s218_s6, 4  ;;  %p1210_p7 = pnand %p845_p2, %p1183_p11  ;;  %s221_s9 = int_to_ptr.hbm [resolvable:$true] %s220_s9 }
  0x1c   : > { %s211_s11 = scalar_lea.sflag [#allocation4], %s210_s22  ;;  %s977_s13 = sshra.s32 %s221_s9, 4  ;;  %s978_s13 = int_to_ptr.hbm [resolvable:$true] %s977_s13 }
  0x1d   : > { %s979_s14 = scalar_lea.hbm %s978_s13, 8  ;;  %p981_p9 = pneg %p1210_p7 }
  0x1e   : > { %p980_p8 = scmp.ne.s32.totalorder %s978_s13, %s979_s14  ;;  %s984_s29 = scalar_lea.hbm %s1320_s0, 16 }
  0x1f   : > { %p985_p11 = scmp.lt.s32.totalorder %s978_s13, %s1320_s0  ;;  %p986_p0 = scmp.lt.s32.totalorder %s984_s29, %s979_s14 }
  0x20   : > { %p982_p10 = pnand %p981_p9, %p980_p8 }
  0x21   : > { %p987_p2 = por %p986_p0, %p985_p11 }
  0x22   : > { %p983_p13 = pneg %p982_p10 }
  0x24   : > { %p988_p5 = pnand %p987_p2, %p983_p13 }
  0x26   : > { %991 = shalt.err (!%p988_p5)
}
  0x27   : > { %838 = dma.hbm_to_vmem [thread:$0]  (!%p1210_p7), %s221_s9, 128, %s223_s8, %s211_s11  }
  0x28   : > { %231 = sbr.rel (%p1156_p3) target bundleno = 975 (0x3cf), region = 40  ;;  %s1227_s22 = sand.u32 (!%p1156_p3), 1, %s1069_s19  }
  0x29   : > { %s794_s6 = sshll.u32 (!%p1156_p3), %s1227_s22, 3  ;;  %s234_s7 = scalar_lea.sflag (!%p1156_p3), [#allocation4], %s1227_s22 }
  0x2a   : > { %s237_s13 = scalar_lea.vmem (!%p1156_p3), [#allocation3], %s794_s6 }
  0x2d   : > { %1052 = dma.done.wait (%p1189_p12), %s234_s7, 128  }
  0x2e   : > { %1054 = vsyncadd (%p1189_p12), %s234_s7, 4294967168 }
  0x2f   : > { %1056 = dma.done.wait (%p43_p1), [#allocation7], 1024  }
  0x30   : > { %1058 = vsyncadd (%p43_p1), [#allocation7], 4294966272  ;;  %v279_v0 = vld [vmem:[#allocation6 + $0x18] sm:$0xff]  ;;  %v278_v1 = vld [vmem:[#allocation6 + $0x10] sm:$0xff]  ;;  %vm284_vm0 = vcmask 261120   ;;  %s1083_s8 = smov 72   ;;  %v308_v16 = vlaneseq }
  0x31   : > { %300 = vmatpush.msra.mxu0 %v279_v0  ;;  %v277_v2 = vld [vmem:[#allocation6 + $0x8] sm:$0xff]  ;;  %v276_v3 = vld [vmem:[#allocation6] sm:$0xff]  ;;  %v275_v4 = vld [vmem:[%s237_s13] sm:$0xff]  ;;  %s1084_s9 = smov 120   ;;  %s1085_s10 = smov 96   ;;  %vm316_vm1 = vcmask 64512  }
  0x32   : > { %v899_v5 = vld [vmem:[%s1322_s2] ss:$0 sm:$0xff]  ;;  %s1086_s11 = smov 112   ;;  %s1087_s14 = smov 80   ;;  %v309_v17 = vshrl.u32 %v308_v16, 7  ;;  %v311_v18 = vand.u32 127, %v308_v16 }
  0x33   : > { %301 = vmatpush.msra.mxu0 %v278_v1  ;;  %s1088_s27 = smov 88   ;;  %s1089_s28 = smov 104  }
  0x34   : > { %s1090_s29 = smov 64   ;;  %vm312_vm2 = vcmp.ge.s32.totalorder %v309_v17, %v311_v18  ;;  %s1091_s30 = smov 56  }
  0x35   : > { %302 = vmatpush.msra.mxu0 %v277_v2  ;;  %s1092_s16 = smov 40   ;;  %s1093_s7 = smov 48  }
  0x36   : > { %s1094_s13 = smov 16   ;;  %s1095_s26 = smov 8  }
  0x37   : > { %303 = vmatpush.msra.mxu0 %v276_v3  ;;  %s1096_s17 = smov 24  }
  0x38   : > { %798 = vmatmul.msk.f32.vlgmr.msra.gmra.mxu0 %vm284_vm0, %v275_v4 }
  0xb5   : > { %v305_v6 = vpop.f32.mrf.mxu0 }
  0xb6   : > { %v306_v7 = vadd.f32 %v899_v5, %v305_v6 }
  0xb8   : > { %565 = vrot.lane.b32.xlu2 %v306_v7, %s1083_s8  ;;  %393 = vrot.lane.b32.xlu1 %v306_v7, %s1084_s9  ;;  %s813_s8 = sshll.u32 %s1151_s25, 3  ;;  %s682_s25 = scalar_lea.sflag [#allocation5], %s1227_s22 }
  0xb9   : > { %314 = vrot.lane.b32.xlu0 %v306_v7, %s1085_s10 }
  0xc0   : > { %478 = vrot.lane.b32.xlu2 %v306_v7, %s1086_s11  ;;  %480 = vrot.lane.b32.xlu1 %v306_v7, %s1087_s14  ;;  %s692_s11 = scalar_lea.hbm %s1325_s5, %s813_s8 }
  0xc1   : > { %395 = vrot.lane.b32.xlu0 %v306_v7, %s1088_s27 }
  0xc9   : > { %563 = vrot.lane.b32.xlu0 %v306_v7, %s1089_s28  ;;  %s274_s28 = scalar_lea.vmem [#allocation9], %s794_s6  ;;  %s1027_s6 = scalar_lea.hbm %s1325_s5, 16 }
  0xd1   : > { %351 = vrot.lane.b32.xlu0 %v306_v7, %s1090_s29  ;;  %s694_s29 = sshll.u32 %s274_s28, 4  ;;  %s695_s29 = int_to_ptr.vmem [resolvable:$true] %s694_s29 }
 0x112   : > { %v566_v8 = vpop.permute.xlu2 %565 }
 0x113   : > { %808 = vmatpush.xpose.msk.msrb.mxu0 %vm316_vm1, %v566_v8 }
 0x11a   : > { %v479_v13 = vpop.permute.xlu2 %478 }
 0x12a   : > { %v394_v9 = vpop.permute.xlu1 %393 }
 0x12b   : > { %v315_v10 = vpop.permute.xlu0 %314 }
 0x12c   : > { %799 = vmatpush.xpose.msk.msra.mxu1 %vm316_vm1, %v315_v10 }
 0x12f   : > { %800 = vmatmul.msk.f32.vlgmr.msra.gmra.mxu1 %vm316_vm1, %v306_v7 }
 0x132   : > { %v481_v11 = vpop.permute.xlu1 %480 }
 0x133   : > { %v396_v12 = vpop.permute.xlu0 %395  ;;  %805 = vmatpush.xpose.msk.msrb.mxu1 %vm316_vm1, %v481_v11 }
 0x134   : > { %802 = vmatpush.xpose.msk.msra.mxu3 %vm316_vm1, %v396_v12 }
 0x137   : > { %803 = vmatmul.msk.f32.vlgmr.msra.gmra.mxu3 %vm316_vm1, %v394_v9  ;;  %806 = vmatmul.msk.f32.vlgmr.msrb.gmra.mxu1 %vm316_vm1, %v479_v13 }
 0x13b   : > { %v564_v14 = vpop.permute.xlu0 %563 }
 0x13c   : > { %809 = vmatmul.msk.f32.vlgmr.msrb.gmra.mxu0 %vm316_vm1, %v564_v14 }
 0x143   : > { %v352_v15 = vpop.permute.xlu0 %351 }
 0x144   : > { %372 = vmatpush.msra.mxu2 %v352_v15 }
 0x1ac   : > { %v338_v19 = vpop.f32.mrf.mxu1 }
 0x1ad   : > { %v341_v20 = vsel %vm312_vm2, %v338_v19, -1e+30 }
 0x1ae   : > { %v342_v21 = vsel %vm316_vm1, %v341_v20, -inf }
 0x1af   : > { %343 = vmax.xlane.f32.xlu1 %v342_v21 }
 0x1b4   : > { %v503_v22 = vpop.f32.mrf.mxu1 }
 0x1b5   : > { %v506_v23 = vsel %vm312_vm2, %v503_v22, -1e+30 }
 0x1b6   : > { %v507_v24 = vsel %vm316_vm1, %v506_v23, -inf }
 0x1b7   : > { %508 = vmax.xlane.f32.xlu0 %v507_v24 }
 0x1b9   : > { %v588_v25 = vpop.f32.mrf.mxu0 }
 0x1ba   : > { %v591_v26 = vsel %vm312_vm2, %v588_v25, -1e+30  ;;  %v418_v28 = vpop.f32.mrf.mxu3 }
 0x1bb   : > { %v592_v27 = vsel %vm316_vm1, %v591_v26, -inf  ;;  %v421_v29 = vsel %vm312_vm2, %v418_v28, -1e+30 }
 0x1bc   : > { %593 = vmax.xlane.f32.xlu2 %v592_v27  ;;  %v422_v30 = vsel %vm316_vm1, %v421_v29, -inf }
 0x1c4   : > { %423 = vmax.xlane.f32.xlu2 %v422_v30 }
 0x1c8   : > { %431 = vrot.lane.b32.xlu1 %v306_v7, %s1091_s30  ;;  %s696_s30 = sshll.u32 %s692_s11, 4  ;;  %s697_s30 = int_to_ptr.hbm [resolvable:$true] %s696_s30 }
 0x1cb   : > { %601 = vrot.lane.b32.xlu0 %v306_v7, %s1092_s16  ;;  %s1021_s16 = sshra.s32 %s697_s30, 4  ;;  %s1022_s16 = int_to_ptr.hbm [resolvable:$true] %s1021_s16 }
 0x1cc   : > { %p1028_p12 = scmp.lt.s32.totalorder %s1022_s16, %s1325_s5 }
 0x1dc   : > { %516 = vrot.lane.b32.xlu2 %v306_v7, %s1093_s7  ;;  %s1023_s7 = scalar_lea.hbm %s1022_s16, 8 }
 0x1dd   : > { %p1024_p1 = scmp.ne.s32.totalorder %s1022_s16, %s1023_s7  ;;  %p1029_p7 = scmp.lt.s32.totalorder %s1027_s6, %s1023_s7 }
 0x1df   : > { %p1025_p3 = pnand %p1024_p1, %p1196_p4  ;;  %p1030_p8 = por %p1029_p7, %p1028_p12 }
 0x1e1   : > { %p1026_p5 = pneg %p1025_p3 }
 0x1e3   : > { %p1031_p9 = pnand %p1030_p8, %p1026_p5 }
 0x222   : > { %v344_v31 = vpop.xlane.xlu1 %343 }
 0x223   : > { %v345_v32 = vsub.f32 %v341_v20, %v344_v31 }
 0x225   : > { %v346_v33 = vmul.f32 1.442695, %v345_v32 }
 0x227   : > { %901 = vpow2.f32 %v346_v33 }
 0x22a   : > { %v509_v34 = vpop.xlane.xlu0 %508 }
 0x22b   : > { %v510_v35 = vsub.f32 %v506_v23, %v509_v34 }
 0x22d   : > { %v902_v36 = vpop.eup %901  ;;  %v511_v37 = vmul.f32 1.442695, %v510_v35 }
 0x22e   : > { %801 = vmatmul.msk.f32.vlgmr.msra.gmra.mxu2 %vm316_vm1, %v902_v36  ;;  %v348_v53 = vsel %vm316_vm1, %v902_v36, 0.0 }
 0x22f   : > { %903 = vpow2.f32 %v511_v37  ;;  %v594_v38 = vpop.xlane.xlu2 %593 }
 0x230   : > { %v595_v39 = vsub.f32 %v591_v26, %v594_v38 }
 0x232   : > { %v596_v40 = vmul.f32 1.442695, %v595_v39 }
 0x234   : > { %905 = vpow2.f32 %v596_v40 }
 0x235   : > { %v904_v41 = vpop.eup %903 }
 0x236   : > { %v513_v42 = vsel %vm316_vm1, %v904_v41, 0.0 }
 0x237   : > { %v424_v43 = vpop.xlane.xlu2 %423  ;;  %514 = vadd.xlane.f32.xlu2 %v513_v42  ;;  %v652_v42 = vld [vmem:[#allocation8 + $0x18] sm:$0xff] }
 0x238   : > { %v425_v44 = vsub.f32 %v421_v29, %v424_v43  ;;  %v651_v43 = vld [vmem:[#allocation8 + $0x10] sm:$0xff]  ;;  %672 = vmatpush.msra.mxu1 %v652_v42 }
 0x23a   : > { %v906_v45 = vpop.eup %905  ;;  %v426_v46 = vmul.f32 1.442695, %v425_v44  ;;  %v432_v47 = vpop.permute.xlu1 %431  ;;  %673 = vmatpush.msra.mxu1 %v651_v43 }
 0x23b   : > { %452 = vmatpush.msrb.mxu2 %v432_v47  ;;  %v598_v48 = vsel %vm316_vm1, %v906_v45, 0.0 }
 0x23c   : > { %907 = vpow2.f32 %v426_v46  ;;  %599 = vadd.xlane.f32.xlu0 %v598_v48  ;;  %v649_v46 = vld [vmem:[#allocation8] sm:$0xff] }
 0x23d   : > { %v602_v49 = vpop.permute.xlu0 %601 }
 0x23e   : > { %622 = vmatpush.msra.mxu2 %v602_v49 }
 0x23f   : > { %v517_v50 = vpop.permute.xlu2 %516 }
 0x240   : > { %537 = vmatpush.msrb.mxu3 %v517_v50  ;;  %v900_v50 = vld [vmem:[%s1324_s4] ss:$0 sm:$0xff] }
 0x241   : > { %807 = vmatmul.msk.f32.vlgmr.msrb.gmra.mxu3 %vm316_vm1, %v904_v41 }
 0x242   : > { %v908_v51 = vpop.eup %907 }
 0x243   : > { %804 = vmatmul.msk.f32.vlgmr.msrb.gmra.mxu2 %vm316_vm1, %v908_v51  ;;  %v428_v52 = vsel %vm316_vm1, %v908_v51, 0.0 }
 0x244   : > { %429 = vadd.xlane.f32.xlu1 %v428_v52 }
 0x24b   : > { %810 = vmatmul.msk.f32.vlgmr.msra.gmra.mxu2 %vm316_vm1, %v906_v45  ;;  %v650_v45 = vld [vmem:[#allocation8 + $0x8] sm:$0xff] }
 0x24c   : > { %349 = vadd.xlane.f32.xlu1 %v348_v53  ;;  %674 = vmatpush.msra.mxu1 %v650_v45 }
 0x24e   : > { %675 = vmatpush.msra.mxu1 %v649_v46 }
 0x2aa   : > { %v515_v54 = vpop.xlane.xlu2 %514 }
 0x2ab   : > { %909 = vrcp.f32 %v515_v54  ;;  %v551_v2 = vand.u32 2147483647, %v515_v54  ;;  %v553_v3 = vand.u32 2147483648, %v515_v54  ;;  %vm547_vm4 = vweird.f32 %v515_v54 }
 0x2ad   : > { %vm552_vm6 = vcmp.eq.f32.partialorder %v551_v2, 8.507059e+37  ;;  %v554_v9 = vor.u32 1.1754944e-38, %v553_v3 }
 0x2af   : > { %v1265_v55 = vpop.xlane.xlu0 %599 }
 0x2b0   : > { %911 = vrcp.f32 %v1265_v55  ;;  %v638_v25 = vand.u32 2147483648, %v1265_v55  ;;  %vm632_vm12 = vweird.f32 %v1265_v55  ;;  %v636_v28 = vand.u32 2147483647, %v1265_v55 }
 0x2b1   : > { %v910_v56 = vpop.eup %909  ;;  %v374_v1 = vpop.f32.mrf.mxu2 }
 0x2b2   : > { %v543_v57 = vmul.f32 %v910_v56, %v515_v54  ;;  %vm548_vm3 = vweird.f32 %v910_v56  ;;  %v639_v33 = vor.u32 1.1754944e-38, %v638_v25  ;;  %vm637_vm2 = vcmp.eq.f32.partialorder %v636_v28, 8.507059e+37 }
 0x2b3   : > { %vm549_vm5 = vmor %vm547_vm4, %vm548_vm3 }
 0x2b4   : > { %v544_v58 = vsub.f32 1.0, %v543_v57 }
 0x2b6   : > { %v1268_v60 = vpop.eup %911  ;;  %v545_v61 = vmul.f32 %v910_v56, %v544_v58 }
 0x2b7   : > { %v430_v59 = vpop.xlane.xlu1 %429  ;;  %v628_v62 = vmul.f32 %v1268_v60, %v1265_v55  ;;  %vm633_vm10 = vweird.f32 %v1268_v60 }
 0x2b8   : > { %913 = vrcp.f32 %v430_v59  ;;  %v546_v63 = vadd.f32 %v910_v56, %v545_v61  ;;  %v468_v10 = vand.u32 2147483648, %v430_v59  ;;  %v466_v12 = vand.u32 2147483647, %v430_v59  ;;  %vm634_vm13 = vmor %vm632_vm12, %vm633_vm10 }
 0x2b9   : > { %v629_v4 = vsub.f32 1.0, %v628_v62  ;;  %vm462_vm8 = vweird.f32 %v430_v59 }
 0x2ba   : > { %v550_v8 = vsel %vm549_vm5, %v910_v56, %v546_v63  ;;  %v469_v20 = vor.u32 1.1754944e-38, %v468_v10  ;;  %vm467_vm11 = vcmp.eq.f32.partialorder %v466_v12, 8.507059e+37  ;;  %vm476_vm5 = vcmask 130112  }
 0x2bb   : > { %v630_v13 = vmul.f32 %v1268_v60, %v629_v4  ;;  %v555_v15 = vsel %vm552_vm6, %v554_v9, %v550_v8  ;;  %vm561_vm6 = vcmask 195712  }
 0x2bd   : > { %v631_v23 = vadd.f32 %v1268_v60, %v630_v13 }
 0x2be   : > { %v914_v0 = vpop.eup %913 }
 0x2bf   : > { %v458_v5 = vmul.f32 %v914_v0, %v430_v59  ;;  %v350_v6 = vpop.xlane.xlu1 %349  ;;  %vm463_vm7 = vweird.f32 %v914_v0  ;;  %v635_v32 = vsel %vm634_vm13, %v1268_v60, %v631_v23 }
 0x2c0   : > { %915 = vrcp.f32 %v350_v6  ;;  %vm464_vm9 = vmor %vm462_vm8, %vm463_vm7  ;;  %v388_v29 = vand.u32 2147483648, %v350_v6  ;;  %v386_v31 = vand.u32 2147483647, %v350_v6  ;;  %vm382_vm15 = vweird.f32 %v350_v6 }
 0x2c1   : > { %v459_v7 = vsub.f32 1.0, %v458_v5  ;;  %v640_v37 = vsel %vm637_vm2, %v639_v33, %v635_v32  ;;  %vm646_vm7 = vcmask 261312  }
 0x2c2   : > { %v389_v35 = vor.u32 1.1754944e-38, %v388_v29  ;;  %vm387_vm4 = vcmp.eq.f32.partialorder %v386_v31, 8.507059e+37 }
 0x2c3   : > { %v460_v11 = vmul.f32 %v914_v0, %v459_v7 }
 0x2c4   : > { %v539_v14 = vpop.f32.mrf.mxu3 }
 0x2c5   : > { %v556_v16 = vmul.f32 %v555_v15, %v539_v14  ;;  %v461_v17 = vadd.f32 %v914_v0, %v460_v11 }
 0x2c6   : > { %v916_v18 = vpop.eup %915  ;;  %v454_v19 = vpop.f32.mrf.mxu2 }
 0x2c7   : > { %v378_v21 = vmul.f32 %v916_v18, %v350_v6  ;;  %v465_v22 = vsel %vm464_vm9, %v914_v0, %v461_v17  ;;  %558 = vrot.lane.b32.xlu1 %v556_v16, %s1094_s13  ;;  %vm383_vm14 = vweird.f32 %v916_v18 }
 0x2c8   : > { %v470_v24 = vsel %vm467_vm11, %v469_v20, %v465_v22  ;;  %vm384_vm3 = vmor %vm382_vm15, %vm383_vm14 }
 0x2c9   : > { %v379_v26 = vsub.f32 1.0, %v378_v21  ;;  %v471_v27 = vmul.f32 %v470_v24, %v454_v19 }
 0x2cb   : > { %v380_v30 = vmul.f32 %v916_v18, %v379_v26  ;;  %473 = vrot.lane.b32.xlu2 %v471_v27, %s1095_s26 }
 0x2cd   : > { %v381_v34 = vadd.f32 %v916_v18, %v380_v30 }
 0x2ce   : > { %v624_v36 = vpop.f32.mrf.mxu2 }
 0x2cf   : > { %v385_v38 = vsel %vm384_vm3, %v916_v18, %v381_v34  ;;  %v641_v39 = vmul.f32 %v640_v37, %v624_v36 }
 0x2d0   : > { %v390_v40 = vsel %vm387_vm4, %v389_v35, %v385_v38 }
 0x2d1   : > { %643 = vrot.lane.b32.xlu0 %v641_v39, %s1096_s17  ;;  %v391_v41 = vmul.f32 %v390_v40, %v374_v1 }
 0x2d3   : > { %392 = vst.msk [vmem:[#allocation2] sm:$0xff] %vm316_vm1, %v391_v41 }
 0x325   : > { %v474_v44 = vpop.permute.xlu2 %473 }
 0x326   : > { %477 = vst.msk [vmem:[#allocation2] sm:$0xff] %vm476_vm5, %v474_v44 }
 0x339   : > { %v559_v47 = vpop.permute.xlu1 %558 }
 0x33a   : > { %562 = vst.msk [vmem:[#allocation2] sm:$0xff] %vm561_vm6, %v559_v47 }
 0x343   : > { %v644_v48 = vpop.permute.xlu0 %643 }
 0x344   : > { %647 = vst.msk [vmem:[#allocation2] sm:$0xff] %vm646_vm7, %v644_v48 }
 0x34b   : > { %v648_v49 = vld [vmem:[#allocation2] sm:$0xff] }
 0x34c   : > { %811 = vmatmul.msk.f32.vlgmr.msra.gmra.mxu1 %vm284_vm0, %v648_v49 }
 0x3c9   : > { %v677_v51 = vpop.f32.mrf.mxu1 }
 0x3ca   : > { %v678_v52 = vadd.f32 %v900_v50, %v677_v51 }
 0x3cc   : > { %680 = vst.msk [vmem:[%s274_s28] sm:$0xff] %vm284_vm0, %v678_v52 }
 0x3cd   : > { %1034 = shalt.err (!%p1031_p9)
}
 0x3ce   : > { %826 = dma.vmem_to_hbm [thread:$0]  (%p1196_p4), %s695_s29, 128, %s697_s30, %s682_s25  }
 0x3cf PF: > { %s708_s22 = sand.u32 1, %s1065_s18   ;;  %p1332_p10 = scmp.ge.s32.totalorder %s1077_s21, 2 }
 0x3d0   : > { %s709_s9 = scalar_lea.sflag [#allocation5], %s708_s22 }
 0x3d1   : > { %p840_p13 = pnand %p1332_p10, %p1200_p6 }
 0x3d3   : > { %p841_p11 = pneg %p840_p13 }
 0x3d5   : > { %1060 = dma.done.wait (%p841_p11), %s709_s9, 128  }
 0x3d6   : > { %1062 = vsyncadd (%p841_p11), %s709_s9, 4294967168  ;;  %p19_p0 = scmp.ge.s32.totalorder %s1170_s12, 4   ;;  %s1333_s18 = smov %s1069_s19 }
 0x3d7   : > { %s1334_s19 = smov %s1073_s20  ;;  %s1335_s20 = smov %s1181_s15 }
 0x3d8   : > { %s1336_s21 = smov %s1170_s12  ;;  %21 = sbr.rel (!%p19_p0) target bundleno = 6 (0x6), region = 93 }
 0x3dd   :  { %715 = vsyncpa [#allocation4], 1 }
 0x3de   :  { %717 = vsyncpa [#allocation4 + $0x1], 1 }
 0x3df   :  { %718 = vsyncpa [#allocation7], 1 }
 0x3e0   :  { %719 = vsyncpa [#allocation5], 1 }
 0x3e1   :  { %721 = vsyncpa [#allocation5 + $0x1], 1 }

</bundles_post_ra>
